<compile_context>
chip_gen: v5e
topology: v5e:2x2
jax: 0.10.0
libtpu: 0.0.40
codegen_flags: <defaults>
</compile_context>

<pallas_src>
import jax
import jax.numpy as jnp
from jax.experimental import pallas as pl
from jax.experimental.pallas import tpu as pltpu


LN0_EPS = 1e-5   # nn.LayerNorm default
LN1_EPS = 1e-2   # nn.LayerNorm((24, 64), eps=0.01)

# Max rows per grid step (per slab).  Worst-case VMEM working set
# (double-buffered in + out):
#   x block: 2048 x 128  f32 = 1.0 MiB  -> ~4 MiB
#   y block:  256 x 1536 f32 = 1.5 MiB  -> ~6 MiB
# => ~10 MiB total: under v5e's 16 MiB default scoped VMEM, well under
# v6e/v7x's 32 MiB default.  Growing past this needs vmem_limit_bytes on v5e
# and a fresh budget check against v7x's 64 MiB physical VMEM per core.
_TILE_X_ROWS = 2048   # packed rows (each packed row = two 64-wide LN groups)
_TILE_Y_ROWS = 256    # flattened (24*64)=1536-wide rows


def _round_up(a, m):
    return ((a + m - 1) // m) * m


# ----------------------------------------------------------------------------
# In-kernel math
# ----------------------------------------------------------------------------
def _ln64_packed(x, w, b):
    """x: (T, 128) = two independent 64-element LN groups per 128-lane row.
    w, b: (1, 128) affine params tiled twice along lanes."""
    x = x.astype(jnp.float32)
    # (1,128) low-half lane mask; broadcasts against (T,128).
    low = jax.lax.broadcasted_iota(jnp.int32, (1, x.shape[-1]), 1) < 64
    inv_n = jnp.float32(1.0 / 64.0)

    # Per-half means: full-row sum + low-masked sum; high = total - low.
    s = jnp.sum(x, axis=-1, keepdims=True)
    s_lo = jnp.sum(jnp.where(low, x, 0.0), axis=-1, keepdims=True)
    mean = jnp.where(low, s_lo, s - s_lo) * inv_n

    # Two-pass (centered) variance — robust at eps=1e-5.
    d = x - mean
    dd = d * d
    v = jnp.sum(dd, axis=-1, keepdims=True)
    v_lo = jnp.sum(jnp.where(low, dd, 0.0), axis=-1, keepdims=True)
    var = jnp.where(low, v_lo, v - v_lo) * inv_n

    inv = jax.lax.rsqrt(var + LN0_EPS)
    return d * inv * w.astype(jnp.float32) + b.astype(jnp.float32)


def _ln_row(y, eps):
    """y: (T, D) — LayerNorm each row over its full (lane-dense) width D."""
    y = y.astype(jnp.float32)
    m = jnp.mean(y, axis=-1, keepdims=True)
    d = y - m
    var = jnp.mean(d * d, axis=-1, keepdims=True)   # two-pass variance
    return d * jax.lax.rsqrt(var + eps)


def _ln0_kernel(xp_ref, w_ref, b_ref, xo_ref):
    xo_ref[...] = _ln64_packed(xp_ref[...], w_ref[...], b_ref[...]).astype(xo_ref.dtype)


def _ln1_kernel(y_ref, yo_ref):
    yo_ref[...] = _ln_row(y_ref[...], LN1_EPS).astype(yo_ref.dtype)


def _fused_kernel(xp_ref, w_ref, b_ref, y_ref, xo_ref, yo_ref):
    _ln0_kernel(xp_ref, w_ref, b_ref, xo_ref)
    _ln1_kernel(y_ref, yo_ref)


# ----------------------------------------------------------------------------
# Wrapper
# ----------------------------------------------------------------------------
_PARALLEL = pltpu.CompilerParams(dimension_semantics=("parallel",))
_ROW_MAP = lambda i: (i, 0)
_PARAM_MAP = lambda i: (0, 0)


@jax.jit
def model_forward(x, y, ln0_weight, ln0_bias):
    x_shape, y_shape = x.shape, y.shape
    hid = x_shape[-1]                              # 64
    norm_elems = y_shape[-2] * y_shape[-1]         # 24 * 64 = 1536

    # ---- LN(64): flatten rows, pack two 64-groups per 128-lane row ----------
    n = 1
    for d in x_shape[:-1]:
        n *= d
    x2 = x.reshape(n, hid)
    n_pad = n + (n % 2)                            # need an even row count
    if n_pad != n:
        # Odd-row fallback: one extra padded row (extra HBM traffic only when
        # n is odd — a no-op for the common even case).
        x2 = jnp.concatenate([x2, jnp.zeros((1, hid), x2.dtype)], axis=0)
    n_packed = n_pad // 2
    xp = x2.reshape(n_packed, 2 * hid)             # contiguous -> free reshape
    w128 = jnp.concatenate([ln0_weight, ln0_weight]).reshape(1, 2 * hid)
    b128 = jnp.concatenate([ln0_bias, ln0_bias]).reshape(1, 2 * hid)

    # ---- LN((24,64)): flatten each group to one lane-dense 1536-wide row ----
    g = 1
    for d in y_shape[:-2]:
        g *= d
    y2 = y.reshape(g, norm_elems)

    # ---- common step count so both slabs keep "parallel" semantics ----------
    G = max(pl.cdiv(n_packed, _TILE_X_ROWS), pl.cdiv(g, _TILE_Y_ROWS))
    tile_x = _round_up(pl.cdiv(n_packed, G), 8)    # <= _TILE_X_ROWS
    tile_y = _round_up(pl.cdiv(g, G), 8)           # <= _TILE_Y_ROWS
    # Fuse only if every grid step owns at least one valid row in BOTH slabs
    # (no fully out-of-bounds blocks, no revisited blocks under "parallel").
    fuse_ok = ((G - 1) * tile_x < n_packed) and ((G - 1) * tile_y < g)

    x_spec = pl.BlockSpec((tile_x, 2 * hid), _ROW_MAP)
    y_spec = pl.BlockSpec((tile_y, norm_elems), _ROW_MAP)
    w_spec = pl.BlockSpec((1, 2 * hid), _PARAM_MAP)   # resident across steps

    if fuse_ok:
        xo_p, yo = pl.pallas_call(
            _fused_kernel,
            out_shape=(
                jax.ShapeDtypeStruct((n_packed, 2 * hid), x.dtype),
                jax.ShapeDtypeStruct((g, norm_elems), y.dtype),
            ),
            grid=(G,),
            in_specs=[x_spec, w_spec, w_spec, y_spec],
            out_specs=(x_spec, y_spec),
            compiler_params=_PARALLEL,
        )(xp, w128, b128, y2)
    else:
        # Mismatched slab sizes: two launches, each keeping megacore sharding.
        tile_x0 = min(_TILE_X_ROWS, _round_up(n_packed, 8))
        tile_y0 = min(_TILE_Y_ROWS, _round_up(g, 8))
        x_spec0 = pl.BlockSpec((tile_x0, 2 * hid), _ROW_MAP)
        y_spec0 = pl.BlockSpec((tile_y0, norm_elems), _ROW_MAP)
        xo_p = pl.pallas_call(
            _ln0_kernel,
            out_shape=jax.ShapeDtypeStruct((n_packed, 2 * hid), x.dtype),
            grid=(pl.cdiv(n_packed, tile_x0),),
            in_specs=[x_spec0, w_spec, w_spec],
            out_specs=x_spec0,
            compiler_params=_PARALLEL,
        )(xp, w128, b128)
        yo = pl.pallas_call(
            _ln1_kernel,
            out_shape=jax.ShapeDtypeStruct((g, norm_elems), y.dtype),
            grid=(pl.cdiv(g, tile_y0),),
            in_specs=[y_spec0],
            out_specs=y_spec0,
            compiler_params=_PARALLEL,
        )(y2)

    x_out = xo_p.reshape(n_pad, hid)[:n].reshape(x_shape)
    y_out = yo.reshape(y_shape)
    return x_out, y_out


if __name__ == "__main__":
    key = jax.random.PRNGKey(0)
    kx, ky, kw, kb = jax.random.split(key, 4)

    # Small shapes consistent with the module's normalized shapes.
    x = jax.random.normal(kx, (2, 8, 64), dtype=jnp.float32)        # LN over 64
    y = jax.random.normal(ky, (2, 3, 24, 64), dtype=jnp.float32)    # LN over (24,64)

    # Deterministic, non-trivial affine params for ln_0.
    ln0_weight = 1.0 + 0.1 * jax.random.normal(kw, (64,), dtype=jnp.float32)
    ln0_bias = 0.1 * jax.random.normal(kb, (64,), dtype=jnp.float32)

    x_out, y_out = model_forward(x, y, ln0_weight, ln0_bias)
    jax.block_until_ready((x_out, y_out))

    # Plain-JAX reference (PyTorch LayerNorm semantics: biased variance).
    def ref_ln(a, axes, eps, w=None, b=None):
        mean = jnp.mean(a, axis=axes, keepdims=True)
        var = jnp.mean((a - mean) ** 2, axis=axes, keepdims=True)
        out = (a - mean) * jax.lax.rsqrt(var + eps)
        if w is not None:
            out = out * w + b
        return out

    ref_x = ref_ln(x, (-1,), LN0_EPS, ln0_weight, ln0_bias)
    ref_y = ref_ln(y, (-2, -1), LN1_EPS)
    assert jnp.allclose(x_out, ref_x, atol=1e-5, rtol=1e-5)
    assert jnp.allclose(y_out, ref_y, atol=1e-5, rtol=1e-5)

    print("KERNEL_OK")
</pallas_src>

<mosaic_0001>
module attributes {stable_mosaic.version = 11 : i64} {
  func.func @_fused_kernel(%arg0: i32, %arg1: memref<8x128xf32, #tpu.memory_space<vmem>>, %arg2: memref<1x128xf32, #tpu.memory_space<vmem>>, %arg3: memref<1x128xf32, #tpu.memory_space<vmem>>, %arg4: memref<8x1536xf32, #tpu.memory_space<vmem>>, %arg5: memref<8x128xf32, #tpu.memory_space<vmem>>, %arg6: memref<8x1536xf32, #tpu.memory_space<vmem>>) attributes {dimension_semantics = [#tpu.dimension_semantics<parallel>], iteration_bounds = array<i64: 1>, scalar_prefetch = 0 : i64, scratch_operands = 0 : i64, tpu.core_type = #tpu.core_type<tc>, window_params = [{transform_indices = @transform_0, window_bounds = array<i64: 8, 128>}, {pipeline_mode = #tpu.pipeline_mode<synchronous>, transform_indices = @transform_1, window_bounds = array<i64: 1, 128>}, {pipeline_mode = #tpu.pipeline_mode<synchronous>, transform_indices = @transform_2, window_bounds = array<i64: 1, 128>}, {transform_indices = @transform_3, window_bounds = array<i64: 8, 1536>}, {transform_indices = @transform_4, window_bounds = array<i64: 8, 128>}, {transform_indices = @transform_5, window_bounds = array<i64: 8, 1536>}]} {
    %c0 = arith.constant 0 : index
    %c0_0 = arith.constant 0 : index
    %0 = vector.load %arg1[%c0, %c0_0] : memref<8x128xf32, #tpu.memory_space<vmem>>, vector<8x128xf32>
    %c0_1 = arith.constant 0 : index
    %c0_2 = arith.constant 0 : index
    %1 = vector.load %arg2[%c0_1, %c0_2] : memref<1x128xf32, #tpu.memory_space<vmem>>, vector<1x128xf32>
    %c0_3 = arith.constant 0 : index
    %c0_4 = arith.constant 0 : index
    %2 = vector.load %arg3[%c0_3, %c0_4] : memref<1x128xf32, #tpu.memory_space<vmem>>, vector<1x128xf32>
    %3 = tpu.iota {dimensions = array<i32: 1>} : vector<1x128xi32>
    %c64_i32 = arith.constant 64 : i32
    %4 = vector.broadcast %c64_i32 : i32 to vector<1x128xi32>
    %5 = arith.cmpi slt, %3, %4 : vector<1x128xi32>
    %cst = arith.constant dense<0.000000e+00> : vector<8xf32>
    %6 = vector.multi_reduction <add>, %0, %cst [1] : vector<8x128xf32> to vector<8xf32>
    %7 = vector.shape_cast %6 : vector<8xf32> to vector<8x1xf32>
    %cst_5 = arith.constant 0.000000e+00 : f32
    %8 = vector.shape_cast %5 : vector<1x128xi1> to vector<1x128xi1>
    %9 = vector.broadcast %8 : vector<1x128xi1> to vector<8x128xi1>
    %10 = vector.broadcast %cst_5 : f32 to vector<8x128xf32>
    %11 = arith.select %9, %0, %10 : vector<8x128xi1>, vector<8x128xf32>
    %cst_6 = arith.constant dense<0.000000e+00> : vector<8xf32>
    %12 = vector.multi_reduction <add>, %11, %cst_6 [1] : vector<8x128xf32> to vector<8xf32>
    %13 = vector.shape_cast %12 : vector<8xf32> to vector<8x1xf32>
    %14 = arith.subf %7, %13 : vector<8x1xf32>
    %15 = vector.shape_cast %5 : vector<1x128xi1> to vector<1x128xi1>
    %16 = vector.broadcast %15 : vector<1x128xi1> to vector<8x128xi1>
    %17 = vector.shape_cast %13 : vector<8x1xf32> to vector<8x1xf32>
    %18 = vector.broadcast %17 : vector<8x1xf32> to vector<8x128xf32>
    %19 = vector.shape_cast %14 : vector<8x1xf32> to vector<8x1xf32>
    %20 = vector.broadcast %19 : vector<8x1xf32> to vector<8x128xf32>
    %21 = arith.select %16, %18, %20 : vector<8x128xi1>, vector<8x128xf32>
    %cst_7 = arith.constant 1.562500e-02 : f32
    %22 = vector.broadcast %cst_7 : f32 to vector<8x128xf32>
    %23 = arith.mulf %21, %22 : vector<8x128xf32>
    %24 = arith.subf %0, %23 : vector<8x128xf32>
    %25 = arith.mulf %24, %24 : vector<8x128xf32>
    %cst_8 = arith.constant dense<0.000000e+00> : vector<8xf32>
    %26 = vector.multi_reduction <add>, %25, %cst_8 [1] : vector<8x128xf32> to vector<8xf32>
    %27 = vector.shape_cast %26 : vector<8xf32> to vector<8x1xf32>
    %cst_9 = arith.constant 0.000000e+00 : f32
    %28 = vector.shape_cast %5 : vector<1x128xi1> to vector<1x128xi1>
    %29 = vector.broadcast %28 : vector<1x128xi1> to vector<8x128xi1>
    %30 = vector.broadcast %cst_9 : f32 to vector<8x128xf32>
    %31 = arith.select %29, %25, %30 : vector<8x128xi1>, vector<8x128xf32>
    %cst_10 = arith.constant dense<0.000000e+00> : vector<8xf32>
    %32 = vector.multi_reduction <add>, %31, %cst_10 [1] : vector<8x128xf32> to vector<8xf32>
    %33 = vector.shape_cast %32 : vector<8xf32> to vector<8x1xf32>
    %34 = arith.subf %27, %33 : vector<8x1xf32>
    %35 = vector.shape_cast %5 : vector<1x128xi1> to vector<1x128xi1>
    %36 = vector.broadcast %35 : vector<1x128xi1> to vector<8x128xi1>
    %37 = vector.shape_cast %33 : vector<8x1xf32> to vector<8x1xf32>
    %38 = vector.broadcast %37 : vector<8x1xf32> to vector<8x128xf32>
    %39 = vector.shape_cast %34 : vector<8x1xf32> to vector<8x1xf32>
    %40 = vector.broadcast %39 : vector<8x1xf32> to vector<8x128xf32>
    %41 = arith.select %36, %38, %40 : vector<8x128xi1>, vector<8x128xf32>
    %cst_11 = arith.constant 1.562500e-02 : f32
    %42 = vector.broadcast %cst_11 : f32 to vector<8x128xf32>
    %43 = arith.mulf %41, %42 : vector<8x128xf32>
    %cst_12 = arith.constant 9.99999974E-6 : f32
    %44 = vector.broadcast %cst_12 : f32 to vector<8x128xf32>
    %45 = arith.addf %43, %44 : vector<8x128xf32>
    %46 = math.rsqrt %45 : vector<8x128xf32>
    %47 = arith.mulf %24, %46 : vector<8x128xf32>
    %48 = vector.broadcast %1 : vector<1x128xf32> to vector<8x128xf32>
    %49 = arith.mulf %47, %48 : vector<8x128xf32>
    %50 = vector.broadcast %2 : vector<1x128xf32> to vector<8x128xf32>
    %51 = arith.addf %49, %50 : vector<8x128xf32>
    %c0_13 = arith.constant 0 : index
    %c0_14 = arith.constant 0 : index
    %52 = vector.load %arg5[%c0_13, %c0_14] : memref<8x128xf32, #tpu.memory_space<vmem>>, vector<8x128xf32>
    tpu.vector_store %arg5[%c0_13, %c0_14], %51 {strides = array<i32>} : memref<8x128xf32, #tpu.memory_space<vmem>>, vector<8x128xf32>,
    %c0_15 = arith.constant 0 : index
    %c0_16 = arith.constant 0 : index
    %53 = vector.load %arg4[%c0_15, %c0_16] : memref<8x1536xf32, #tpu.memory_space<vmem>>, vector<8x1536xf32>
    %cst_17 = arith.constant dense<0.000000e+00> : vector<8xf32>
    %54 = vector.multi_reduction <add>, %53, %cst_17 [1] : vector<8x1536xf32> to vector<8xf32>
    %55 = vector.shape_cast %54 : vector<8xf32> to vector<8x1xf32>
    %cst_18 = arith.constant 1.536000e+03 : f32
    %56 = vector.broadcast %cst_18 : f32 to vector<8x1xf32>
    %57 = arith.divf %55, %56 : vector<8x1xf32>
    %58 = vector.broadcast %57 : vector<8x1xf32> to vector<8x1536xf32>
    %59 = arith.subf %53, %58 : vector<8x1536xf32>
    %60 = arith.mulf %59, %59 : vector<8x1536xf32>
    %cst_19 = arith.constant dense<0.000000e+00> : vector<8xf32>
    %61 = vector.multi_reduction <add>, %60, %cst_19 [1] : vector<8x1536xf32> to vector<8xf32>
    %62 = vector.shape_cast %61 : vector<8xf32> to vector<8x1xf32>
    %cst_20 = arith.constant 1.536000e+03 : f32
    %63 = vector.broadcast %cst_20 : f32 to vector<8x1xf32>
    %64 = arith.divf %62, %63 : vector<8x1xf32>
    %cst_21 = arith.constant 0.00999999977 : f32
    %65 = vector.broadcast %cst_21 : f32 to vector<8x1xf32>
    %66 = arith.addf %64, %65 : vector<8x1xf32>
    %67 = math.rsqrt %66 : vector<8x1xf32>
    %68 = vector.broadcast %67 : vector<8x1xf32> to vector<8x1536xf32>
    %69 = arith.mulf %59, %68 : vector<8x1536xf32>
    %c0_22 = arith.constant 0 : index
    %c0_23 = arith.constant 0 : index
    %70 = vector.load %arg6[%c0_22, %c0_23] : memref<8x1536xf32, #tpu.memory_space<vmem>>, vector<8x1536xf32>
    tpu.vector_store %arg6[%c0_22, %c0_23], %69 {strides = array<i32>} : memref<8x1536xf32, #tpu.memory_space<vmem>>, vector<8x1536xf32>,
    return
  }
  func.func @transform_0(%arg0: i32) -> (i32, i32) {
    %c0_i32 = arith.constant 0 : i32
    %c0_i32_0 = arith.constant 0 : i32
    return %arg0, %c0_i32 : i32, i32
  }
  func.func @transform_1(%arg0: i32) -> (i32, i32) {
    %c0_i32 = arith.constant 0 : i32
    %c0_i32_0 = arith.constant 0 : i32
    %c0_i32_1 = arith.constant 0 : i32
    return %c0_i32, %c0_i32_0 : i32, i32
  }
  func.func @transform_2(%arg0: i32) -> (i32, i32) {
    %c0_i32 = arith.constant 0 : i32
    %c0_i32_0 = arith.constant 0 : i32
    %c0_i32_1 = arith.constant 0 : i32
    return %c0_i32, %c0_i32_0 : i32, i32
  }
  func.func @transform_3(%arg0: i32) -> (i32, i32) {
    %c0_i32 = arith.constant 0 : i32
    %c0_i32_0 = arith.constant 0 : i32
    return %arg0, %c0_i32 : i32, i32
  }
  func.func @transform_4(%arg0: i32) -> (i32, i32) {
    %c0_i32 = arith.constant 0 : i32
    %c0_i32_0 = arith.constant 0 : i32
    return %arg0, %c0_i32 : i32, i32
  }
  func.func @transform_5(%arg0: i32) -> (i32, i32) {
    %c0_i32 = arith.constant 0 : i32
    %c0_i32_0 = arith.constant 0 : i32
    return %arg0, %c0_i32 : i32, i32
  }
}

</mosaic_0001>

<bundles_post_ra>
// kernel: model_forward.1
= control target key start
LH: loop header
LB: loop body
LE: loop exit
PB: predicated region body
PF: predicated region fallthrough
CT: control target
= control target key end

     0   :  { %v22_v0 = vlaneseq  ;;  %v189_v27 = vmov 1536.0   ;;  %s375_s3 = inlined_call_operand.vmem [shape: f32[6,1536], index: 3, kind: input, shape index: {}]   ;;  %s376_s0 = inlined_call_operand.vmem [shape: f32[8,128], index: 0, kind: input, shape index: {}]   ;;  %s377_s1 = inlined_call_operand.vmem [shape: f32[1,128], index: 1, kind: input, shape index: {}]   ;;  %s378_s2 = inlined_call_operand.vmem [shape: f32[1,128], index: 2, kind: input, shape index: {}]   ;;  %s379_s4 = inlined_call_operand.vmem [shape: f32[8,128], index: 4, kind: output, shape index: {0}]   ;;  %s380_s5 = inlined_call_operand.vmem [shape: f32[6,1536], index: 5, kind: output, shape index: {1}]  }
   0x1   :  { %v66_v1 = vld [vmem:[%s375_s3] sm:$0xff]  ;;  %v67_v2 = vld [vmem:[%s375_s3 + $0x8] sm:$0xff]  ;;  %v68_v3 = vld [vmem:[%s375_s3 + $0x10] sm:$0xff]  ;;  %183 = vrcp.f32 %v189_v27 }
   0x2   :  { %v78_v4 = vadd.f32 %v67_v2, %v66_v1  ;;  %v229_v5 = vand.u32 127, %v22_v0  ;;  %v69_v6 = vld [vmem:[%s375_s3 + $0x18] sm:$0xff]  ;;  %v70_v8 = vld [vmem:[%s375_s3 + $0x20] sm:$0xff]  ;;  %v71_v12 = vld [vmem:[%s375_s3 + $0x28] sm:$0xff] }
   0x3   :  { %v19_v9 = vld [vmem:[%s376_s0] sm:$0xff]  ;;  %v72_v14 = vld [vmem:[%s375_s3 + $0x30] sm:$0xff]  ;;  %v73_v16 = vld [vmem:[%s375_s3 + $0x38] sm:$0xff] }
   0x4   :  { %v79_v7 = vadd.f32 %v78_v4, %v68_v3  ;;  %vm24_vm0 = vcmp.lt.s32.totalorder %v229_v5, 64  ;;  %v74_v18 = vld [vmem:[%s375_s3 + $0x40] sm:$0xff]  ;;  %v75_v20 = vld [vmem:[%s375_s3 + $0x48] sm:$0xff]  ;;  %v76_v22 = vld [vmem:[%s375_s3 + $0x50] sm:$0xff] }
   0x5   :  { %v29_v11 = vsel %vm24_vm0, %v19_v9, 0.0  ;;  %v77_v24 = vld [vmem:[%s375_s3 + $0x58] sm:$0xff]  ;;  %v181_v5 = vld [vmem:[%s377_s1] ss:$0 sm:$0xff] }
   0x6   :  { %v80_v10 = vadd.f32 %v79_v7, %v69_v6  ;;  %30 = vadd.xlane.f32.xlu1 %v29_v11 }
   0x7   :  { %v184_v28 = vpop.eup %183 }
   0x8   :  { %v81_v13 = vadd.f32 %v80_v10, %v70_v8  ;;  %v92_v29 = vmul.f32 1536.0, %v184_v28  ;;  %vm96_vm1 = vweird.f32 %v184_v28 }
   0xa   :  { %v82_v15 = vadd.f32 %v81_v13, %v71_v12  ;;  %v93_v30 = vsub.f32 1.0, %v92_v29 }
   0xc   :  { %v83_v17 = vadd.f32 %v82_v15, %v72_v14  ;;  %v94_v31 = vmul.f32 %v184_v28, %v93_v30 }
   0xe   :  { %v84_v19 = vadd.f32 %v83_v17, %v73_v16  ;;  %v95_v32 = vadd.f32 %v184_v28, %v94_v31 }
  0x10   :  { %v85_v21 = vadd.f32 %v84_v19, %v74_v18  ;;  %v97_v33 = vsel %vm96_vm1, %v184_v28, %v95_v32 }
  0x12   :  { %v86_v23 = vadd.f32 %v85_v21, %v75_v20 }
  0x14   :  { %v87_v25 = vadd.f32 %v86_v23, %v76_v22 }
  0x16   :  { %v88_v26 = vadd.f32 %v87_v25, %v77_v24 }
  0x18   :  { %89 = vadd.xlane.f32.xlu0 %v88_v26 }
  0x20   :  { %25 = vadd.xlane.f32.xlu0 %v19_v9 }
  0x79   :  { %v31_v39 = vpop.xlane.xlu1 %30 }
  0x8b   :  { %v90_v34 = vpop.xlane.xlu0 %89 }
  0x8c   :  { %v98_v35 = vmul.f32 %v97_v33, %v90_v34 }
  0x8e   :  { %v264_v36 = vsub.f32 %v66_v1, %v98_v35  ;;  %v266_v37 = vsub.f32 %v67_v2, %v98_v35  ;;  %v268_v38 = vsub.f32 %v68_v3, %v98_v35  ;;  %v274_v42 = vsub.f32 %v69_v6, %v98_v35 }
  0x8f   :  { %v276_v45 = vsub.f32 %v70_v8, %v98_v35  ;;  %v282_v49 = vsub.f32 %v71_v12, %v98_v35  ;;  %v286_v53 = vsub.f32 %v72_v14, %v98_v35  ;;  %v290_v57 = vsub.f32 %v73_v16, %v98_v35 }
  0x90   :  { %v111_v40 = vmul.f32 %v264_v36, %v264_v36  ;;  %v112_v41 = vmul.f32 %v266_v37, %v266_v37  ;;  %v113_v46 = vmul.f32 %v268_v38, %v268_v38  ;;  %v114_v50 = vmul.f32 %v274_v42, %v274_v42 }
  0x91   :  { %v115_v54 = vmul.f32 %v276_v45, %v276_v45  ;;  %v116_v58 = vmul.f32 %v282_v49, %v282_v49  ;;  %v294_v61 = vsub.f32 %v74_v18, %v98_v35  ;;  %v117_v62 = vmul.f32 %v286_v53, %v286_v53 }
  0x92   :  { %v123_v47 = vadd.f32 %v112_v41, %v111_v40  ;;  %v300_v1 = vsub.f32 %v75_v20, %v98_v35  ;;  %v118_v2 = vmul.f32 %v290_v57, %v290_v57  ;;  %v304_v4 = vsub.f32 %v76_v22, %v98_v35 }
  0x93   :  { %v26_v43 = vpop.xlane.xlu0 %25  ;;  %v119_v6 = vmul.f32 %v294_v61, %v294_v61  ;;  %v308_v8 = vsub.f32 %v77_v24, %v98_v35 }
  0x94   :  { %v32_v44 = vsub.f32 %v26_v43, %v31_v39  ;;  %v124_v51 = vadd.f32 %v123_v47, %v113_v46  ;;  %v121_v11 = vmul.f32 %v304_v4, %v304_v4 }
  0x95   :  { %v122_v13 = vmul.f32 %v308_v8, %v308_v8 }
  0x96   :  { %v33_v48 = vsel %vm24_vm0, %v31_v39, %v32_v44  ;;  %v125_v55 = vadd.f32 %v124_v51, %v114_v50 }
  0x97   :  { %v34_v52 = vmul.f32 0.015625, %v33_v48 }
  0x98   :  { %v126_v59 = vadd.f32 %v125_v55, %v115_v54 }
  0x99   :  { %v35_v56 = vsub.f32 %v19_v9, %v34_v52  ;;  %v120_v9 = vmul.f32 %v300_v1, %v300_v1 }
  0x9a   :  { %v127_v63 = vadd.f32 %v126_v59, %v116_v58 }
  0x9b   :  { %v36_v60 = vmul.f32 %v35_v56, %v35_v56 }
  0x9c   :  { %v128_v3 = vadd.f32 %v127_v63, %v117_v62 }
  0x9d   :  { %37 = vadd.xlane.f32.xlu1 %v36_v60  ;;  %v39_v0 = vsel %vm24_vm0, %v36_v60, 0.0 }
  0x9e   :  { %40 = vadd.xlane.f32.xlu2 %v39_v0  ;;  %v129_v7 = vadd.f32 %v128_v3, %v118_v2 }
  0xa0   :  { %v130_v10 = vadd.f32 %v129_v7, %v119_v6 }
  0xa2   :  { %v131_v12 = vadd.f32 %v130_v10, %v120_v9 }
  0xa4   :  { %v132_v14 = vadd.f32 %v131_v12, %v121_v11 }
  0xa6   :  { %v133_v15 = vadd.f32 %v132_v14, %v122_v13 }
  0xa8   :  { %134 = vadd.xlane.f32.xlu2 %v133_v15 }
 0x110   :  { %v38_v16 = vpop.xlane.xlu1 %37 }
 0x111   :  { %v41_v17 = vpop.xlane.xlu2 %40 }
 0x112   :  { %v42_v18 = vsub.f32 %v38_v16, %v41_v17 }
 0x114   :  { %v43_v19 = vsel %vm24_vm0, %v41_v17, %v42_v18 }
 0x115   :  { %v44_v20 = vmul.f32 0.015625, %v43_v19 }
 0x117   :  { %v45_v21 = vadd.f32 1e-05, %v44_v20 }
 0x119   :  { %185 = vrsqrt.f32 %v45_v21  ;;  %vm52_vm3 = vweird.f32 %v45_v21 }
 0x11b   :  { %v135_v22 = vpop.xlane.xlu2 %134 }
 0x11c   :  { %v136_v23 = vmul.f32 %v135_v22, %v97_v33  ;;  %v182_v33 = vld [vmem:[%s378_s2] ss:$0 sm:$0xff] }
 0x11e   :  { %v137_v26 = vadd.f32 0.01, %v136_v23 }
 0x11f   :  { %v186_v24 = vpop.eup %185 }
 0x120   :  { %v47_v25 = vmul.f32 %v186_v24, %v45_v21  ;;  %187 = vrsqrt.f32 %v137_v26  ;;  %vm53_vm2 = vweird.f32 %v186_v24  ;;  %vm144_vm6 = vweird.f32 %v137_v26 }
 0x121   :  { %vm54_vm4 = vmor %vm52_vm3, %vm53_vm2 }
 0x122   :  { %v48_v27 = vmul.f32 %v186_v24, %v47_v25 }
 0x124   :  { %v49_v28 = vmul.f32 0.5, %v48_v27 }
 0x126   :  { %v50_v29 = vsub.f32 1.5, %v49_v28  ;;  %v188_v30 = vpop.eup %187 }
 0x127   :  { %v139_v32 = vmul.f32 %v188_v30, %v137_v26  ;;  %vm145_vm5 = vweird.f32 %v188_v30 }
 0x128   :  { %v51_v31 = vmul.f32 %v186_v24, %v50_v29  ;;  %vm146_vm7 = vmor %vm144_vm6, %vm145_vm5 }
 0x129   :  { %v140_v39 = vmul.f32 %v188_v30, %v139_v32 }
 0x12a   :  { %v55_v34 = vsel %vm54_vm4, %v186_v24, %v51_v31 }
 0x12b   :  { %v56_v35 = vmul.f32 %v55_v34, %v35_v56  ;;  %v141_v41 = vmul.f32 0.5, %v140_v39 }
 0x12d   :  { %v60_v40 = vmul.f32 %v181_v5, %v56_v35  ;;  %v142_v44 = vsub.f32 1.5, %v141_v41 }
 0x12f   :  { %v64_v43 = vadd.f32 %v182_v33, %v60_v40  ;;  %v143_v46 = vmul.f32 %v188_v30, %v142_v44 }
 0x131   :  { %65 = vst [vmem:[%s379_s4] sm:$0xff] %v64_v43  ;;  %v147_v47 = vsel %vm146_vm7, %v188_v30, %v143_v46 }
 0x132   :  { %v148_v48 = vmul.f32 %v147_v47, %v264_v36  ;;  %v149_v50 = vmul.f32 %v147_v47, %v266_v37  ;;  %v150_v51 = vmul.f32 %v147_v47, %v268_v38  ;;  %v151_v52 = vmul.f32 %v147_v47, %v274_v42 }
 0x133   :  { %v152_v54 = vmul.f32 %v147_v47, %v276_v45  ;;  %v153_v55 = vmul.f32 %v147_v47, %v282_v49  ;;  %v154_v36 = vmul.f32 %v147_v47, %v286_v53  ;;  %v155_v37 = vmul.f32 %v147_v47, %v290_v57 }
 0x134   :  { %160 = vst [vmem:[%s380_s5] sm:$0xff] %v148_v48  ;;  %v156_v38 = vmul.f32 %v147_v47, %v294_v61  ;;  %v157_v42 = vmul.f32 %v147_v47, %v300_v1  ;;  %v158_v45 = vmul.f32 %v147_v47, %v304_v4  ;;  %v159_v49 = vmul.f32 %v147_v47, %v308_v8 }
 0x135   :  { %161 = vst [vmem:[%s380_s5 + $0x8] sm:$0xff] %v149_v50 }
 0x136   :  { %162 = vst [vmem:[%s380_s5 + $0x10] sm:$0xff] %v150_v51 }
 0x137   :  { %163 = vst [vmem:[%s380_s5 + $0x18] sm:$0xff] %v151_v52 }
 0x138   :  { %164 = vst [vmem:[%s380_s5 + $0x20] sm:$0xff] %v152_v54 }
 0x139   :  { %165 = vst [vmem:[%s380_s5 + $0x28] sm:$0xff] %v153_v55 }
 0x13a   :  { %166 = vst [vmem:[%s380_s5 + $0x30] sm:$0xff] %v154_v36 }
 0x13b   :  { %167 = vst [vmem:[%s380_s5 + $0x38] sm:$0xff] %v155_v37 }
 0x13c   :  { %168 = vst [vmem:[%s380_s5 + $0x40] sm:$0xff] %v156_v38 }
 0x13d   :  { %169 = vst [vmem:[%s380_s5 + $0x48] sm:$0xff] %v157_v42 }
 0x13e   :  { %170 = vst [vmem:[%s380_s5 + $0x50] sm:$0xff] %v158_v45 }
 0x13f   :  { %171 = vst [vmem:[%s380_s5 + $0x58] sm:$0xff] %v159_v49 }

</bundles_post_ra>
